<compile_context>
chip_gen: v5e
topology: v5e:2x2
jax: 0.10.0
libtpu: 0.0.40
codegen_flags: <defaults>
</compile_context>

<pallas_src>
import functools

import jax
import jax.numpy as jnp
from jax import lax
from jax.experimental import pallas as pl
from jax.experimental.pallas import tpu as pltpu

_VMEM_LIMIT_BYTES = 48 * 1024 * 1024  # above 16/32 MiB defaults, below 64 MiB v7x physical


def _round_up(x, m):
    return ((x + m - 1) // m) * m


# ----------------------------- Pallas kernels ------------------------------ #

def _proj_kernel(h_ref, w_ref, alt_ref, ar_ref, feat_ref, elt_ref, er_ref):
    """Per (metapath, row-tile): feat = h @ W (bf16 MXU, f32 acc) and fused el/er."""
    h_bf = h_ref[...].astype(jnp.bfloat16)                    # [T, Fin]
    feat = jnp.dot(h_bf, w_ref[...],
                   preferred_element_type=jnp.float32)        # [T, H*D] f32

    # el^T[h, t] = sum_k Al[h, k] * feat[t, k]   (all heads in one MXU pass, no transpose)
    elt_ref[...] = lax.dot_general(alt_ref[...], feat, (((1,), (1,)), ((), ())),
                                   preferred_element_type=jnp.float32)      # [H, T]
    # er[t, h] = sum_k feat[t, k] * Ar[k, h]
    er_ref[...] = jnp.dot(feat, ar_ref[...],
                          preferred_element_type=jnp.float32)               # [T, H]
    feat_ref[...] = feat.astype(jnp.bfloat16)                               # [T, H*D]


def _gat_attn_kernel(adj_ref, feat_ref, elt_ref, er_ref, b_ref, out_ref,
                     *, num_heads, head_dim):
    """Per (metapath, dst-tile): masked softmax attention + aggregation + bias + ELU."""
    # Mask work hoisted out of the head loop; adjacency arrives as int8 {0,1}.
    adjf = adj_ref[...].astype(jnp.float32)                   # [T, N]
    neg = (adjf - 1.0) * jnp.float32(1e30)                    # 0 on edges, -1e30 elsewhere
    deg_ok = jnp.max(adjf, axis=-1, keepdims=True) > 0.5      # [T, 1] any in-edge?
    er = er_ref[...]                                          # [T, H] f32

    parts = []
    for a in range(num_heads):                                # static unroll over heads
        lo = a * head_dim
        f_a = feat_ref[:, lo:lo + head_dim]                   # [N, D] bf16
        el_row = elt_ref[a:a + 1, :]                          # [1, N] f32
        er_col = er[:, a:a + 1]                               # [T, 1] f32

        s = er_col + el_row                                   # [T, N]
        s = jnp.maximum(s, 0.2 * s)                           # leaky_relu(slope=0.2)
        s = s + neg                                           # mask off-graph edges

        m = jnp.max(s, axis=-1, keepdims=True)
        p = jnp.exp(s - m)                                    # masked entries underflow to 0
        denom = jnp.sum(p, axis=-1, keepdims=True)

        # Aggregate first (bf16 MXU), normalize after with an EUP reciprocal.
        agg = jnp.dot(p.astype(jnp.bfloat16), f_a,
                      preferred_element_type=jnp.float32)     # [T, D]
        inv = pl.reciprocal(denom, approx=True)               # safe: denom >= 1 when deg_ok
        parts.append(jnp.where(deg_ok, agg * inv, jnp.float32(0.0)))

    rst = jnp.concatenate(parts, axis=-1) + b_ref[...]        # [T, H*D] lane-dense
    out_ref[...] = jnp.where(rst > 0, rst,
                             jnp.exp(jnp.minimum(rst, 0.0)) - 1.0)          # ELU


def _linear_kernel(x_ref, w_ref, b_ref, o_ref):
    """Final prediction head: y = x @ W + b (bf16 MXU, f32 acc)."""
    o_ref[...] = (jnp.dot(x_ref[...].astype(jnp.bfloat16), w_ref[...],
                          preferred_element_type=jnp.float32) + b_ref[...])


# ------------------------------ Wrappers ----------------------------------- #

def _build_el_er_mats(al, ar):
    """Embed per-head attention vectors into block matrices for fused MXU el/er."""
    H, D = al.shape
    HD = H * D
    alt = jnp.zeros((H, HD), jnp.float32)      # el^T = alt @ feat^T
    armat = jnp.zeros((HD, H), jnp.float32)    # er   = feat @ armat
    for hh in range(H):
        alt = alt.at[hh, hh * D:(hh + 1) * D].set(al[hh])
        armat = armat.at[hh * D:(hh + 1) * D, hh].set(ar[hh])
    return alt, armat


def gnn_layer(adj_i8, h, layer_params, *, tile):
    """One GNNLayer: per-metapath GATConv, metapaths batched on a grid axis.

    adj_i8 : [M, Np, Np] int8 (padded, adj[m, dst, src] = 1 on edge)
    h      : [Np, Fin]   float32 (padded)
    returns: [M, Np, H*D] float32
    """
    M, n_pad, _ = adj_i8.shape
    fin = h.shape[1]
    H, D = layer_params[0]["al"].shape
    HD = H * D
    nt = n_pad // tile

    # Stack per-metapath parameters.
    w = jnp.stack([p["w"] for p in layer_params]).astype(jnp.bfloat16)       # [M, Fin, HD]
    mats = [_build_el_er_mats(p["al"], p["ar"]) for p in layer_params]
    alt = jnp.stack([m[0] for m in mats])                                    # [M, H, HD]
    armat = jnp.stack([m[1] for m in mats])                                  # [M, HD, H]
    bias = jnp.stack([p["b"].reshape(1, HD) for p in layer_params]).astype(jnp.float32)

    cparams = pltpu.CompilerParams(
        dimension_semantics=("parallel", "parallel"),
        vmem_limit_bytes=_VMEM_LIMIT_BYTES)

    # --- Projection + fused el/er (once per metapath, tiled over node rows) ---
    feat, el_t, er = pl.pallas_call(
        _proj_kernel,
        grid=(M, nt),
        in_specs=[
            pl.BlockSpec((tile, fin), lambda m, i: (i, 0)),            # h rows
            pl.BlockSpec((None, fin, HD), lambda m, i: (m, 0, 0)),     # W[m]
            pl.BlockSpec((None, H, HD), lambda m, i: (m, 0, 0)),       # Al[m]
            pl.BlockSpec((None, HD, H), lambda m, i: (m, 0, 0)),       # Ar[m]
        ],
        out_specs=(
            pl.BlockSpec((None, tile, HD), lambda m, i: (m, i, 0)),    # feat (bf16)
            pl.BlockSpec((None, H, tile), lambda m, i: (m, 0, i)),     # el^T
            pl.BlockSpec((None, tile, H), lambda m, i: (m, i, 0)),     # er
        ),
        out_shape=(
            jax.ShapeDtypeStruct((M, n_pad, HD), jnp.bfloat16),
            jax.ShapeDtypeStruct((M, H, n_pad), jnp.float32),
            jax.ShapeDtypeStruct((M, n_pad, H), jnp.float32),
        ),
        compiler_params=cparams,
    )(h, w, alt, armat)

    # --- Masked attention + aggregation (tiled over destination nodes) ---
    out = pl.pallas_call(
        functools.partial(_gat_attn_kernel, num_heads=H, head_dim=D),
        grid=(M, nt),
        in_specs=[
            pl.BlockSpec((None, tile, n_pad), lambda m, i: (m, i, 0)),  # adj rows (int8)
            pl.BlockSpec((None, n_pad, HD), lambda m, i: (m, 0, 0)),    # feat (full src)
            pl.BlockSpec((None, H, n_pad), lambda m, i: (m, 0, 0)),     # el^T (full src)
            pl.BlockSpec((None, tile, H), lambda m, i: (m, i, 0)),      # er (dst tile)
            pl.BlockSpec((None, 1, HD), lambda m, i: (m, 0, 0)),        # bias
        ],
        out_specs=pl.BlockSpec((None, tile, HD), lambda m, i: (m, i, 0)),
        out_shape=jax.ShapeDtypeStruct((M, n_pad, HD), jnp.float32),
        compiler_params=cparams,
    )(adj_i8, feat, el_t, er, bias)
    return out


def predict(h, pparams, *, tile):
    """Final nn.Linear, tiled over node rows."""
    n_pad, fin = h.shape
    out_size = pparams["w"].shape[1]
    nt = n_pad // tile
    w = pparams["w"].astype(jnp.bfloat16)
    b = pparams["b"].astype(jnp.float32)
    return pl.pallas_call(
        _linear_kernel,
        grid=(nt,),
        in_specs=[
            pl.BlockSpec((tile, fin), lambda i: (i, 0)),
            pl.BlockSpec((fin, out_size), lambda i: (0, 0)),
            pl.BlockSpec((1, out_size), lambda i: (0, 0)),
        ],
        out_specs=pl.BlockSpec((tile, out_size), lambda i: (i, 0)),
        out_shape=jax.ShapeDtypeStruct((n_pad, out_size), jnp.float32),
        compiler_params=pltpu.CompilerParams(
            dimension_semantics=("parallel",),
            vmem_limit_bytes=_VMEM_LIMIT_BYTES),
    )(h, w, b)


def hoganet_forward(graphs, h, params):
    """Full HoGANet forward: stacked GNNLayers then prediction head."""
    N = h.shape[0]
    tile = min(256, _round_up(N, 8))
    n_pad = _round_up(N, tile)
    pad = n_pad - N

    # int8 adjacency (4x less HBM traffic); pad the node axes (padded nodes have no edges).
    adj = jnp.stack([(g > 0).astype(jnp.int8) for g in graphs])             # [M, N, N]
    adj = jnp.pad(adj, ((0, 0), (0, pad), (0, pad)))
    hp = jnp.pad(h.astype(jnp.float32), ((0, pad), (0, 0)))

    for layer_params in params["layers"]:
        out = gnn_layer(adj, hp, layer_params, tile=tile)                   # [M, Np, H*D]
        stacked = jnp.transpose(out, (1, 0, 2))                             # torch.stack(dim=1)
        hp = jnp.squeeze(stacked)                                           # torch .squeeze()
        # TODO(synk): like the reference module, this only composes across layers for M == 1
        #             (no HAN semantic attention over metapaths is present in the spec).
    y = predict(hp, params["predict"], tile=tile)                           # [Np, out]
    return y[:N]


# ----------------------------- Initialization ------------------------------ #

def init_gat_params(key, in_size, out_size, num_heads):
    k1, k2, k3 = jax.random.split(key, 3)
    scale = 1.0 / jnp.sqrt(jnp.float32(in_size))
    return dict(
        w=jax.random.normal(k1, (in_size, num_heads * out_size), jnp.float32) * scale,
        al=jax.random.normal(k2, (num_heads, out_size), jnp.float32) * 0.1,
        ar=jax.random.normal(k3, (num_heads, out_size), jnp.float32) * 0.1,
        b=jnp.zeros((num_heads, out_size), jnp.float32),
    )


def init_hoganet_params(key, num_meta_paths, in_size, hidden_size, out_size, num_heads):
    layers = []
    key, sub = jax.random.split(key)
    layers.append([init_gat_params(jax.random.fold_in(sub, m), in_size, hidden_size,
                                   num_heads[0]) for m in range(num_meta_paths)])
    for l in range(1, len(num_heads)):
        key, sub = jax.random.split(key)
        layers.append([init_gat_params(jax.random.fold_in(sub, m),
                                       hidden_size * num_heads[l - 1], hidden_size,
                                       num_heads[l]) for m in range(num_meta_paths)])
    key, kw, _ = jax.random.split(key, 3)
    in_pred = hidden_size * num_heads[-1]
    pred = dict(
        w=jax.random.normal(kw, (in_pred, out_size), jnp.float32) / jnp.sqrt(jnp.float32(in_pred)),
        b=jnp.zeros((1, out_size), jnp.float32),
    )
    return dict(layers=layers, predict=pred)


# --------------------------------- Main ------------------------------------ #

if __name__ == "__main__":
    key = jax.random.PRNGKey(0)

    # Small, shape-consistent config (num_meta_paths=1 so .squeeze() composes layers).
    num_meta_paths = 1
    N = 16            # nodes
    in_size = 8
    hidden_size = 8
    out_size = 4
    num_heads = [2, 2]

    # Deterministic inputs: node features + dense adjacency with self-loops.
    key, kh, kg = jax.random.split(key, 3)
    h = jax.random.normal(kh, (N, in_size), jnp.float32)
    graphs = []
    for m in range(num_meta_paths):
        km = jax.random.fold_in(kg, m)
        a = jax.random.bernoulli(km, 0.3, (N, N)).astype(jnp.float32)
        a = jnp.clip(a + jnp.eye(N, dtype=jnp.float32), 0.0, 1.0)  # ensure in-degree >= 1
        graphs.append(a)

    key, kp = jax.random.split(key)
    params = init_hoganet_params(kp, num_meta_paths, in_size, hidden_size,
                                 out_size, num_heads)

    out = jax.jit(hoganet_forward)(graphs, h, params)
    out = jax.block_until_ready(out)
    assert out.shape == (N, out_size), out.shape
    assert bool(jnp.all(jnp.isfinite(out)))
    print("KERNEL_OK")
</pallas_src>

<mosaic_0001>
module attributes {stable_mosaic.version = 11 : i64} {
  func.func @_proj_kernel(%arg0: i32, %arg1: i32, %arg2: memref<16x8xf32, #tpu.memory_space<vmem>>, %arg3: memref<1x8x16xbf16, #tpu.memory_space<vmem>>, %arg4: memref<1x2x16xf32, #tpu.memory_space<vmem>>, %arg5: memref<1x16x2xf32, #tpu.memory_space<vmem>>, %arg6: memref<1x16x16xbf16, #tpu.memory_space<vmem>>, %arg7: memref<1x2x16xf32, #tpu.memory_space<vmem>>, %arg8: memref<1x16x2xf32, #tpu.memory_space<vmem>>) attributes {dimension_semantics = [#tpu.dimension_semantics<parallel>, #tpu.dimension_semantics<parallel>], iteration_bounds = array<i64: 1, 1>, scalar_prefetch = 0 : i64, scratch_operands = 0 : i64, tpu.core_type = #tpu.core_type<tc>, window_params = [{transform_indices = @transform_0, window_bounds = array<i64: 16, 8>}, {transform_indices = @transform_1, window_bounds = array<i64: 1, 8, 16>}, {transform_indices = @transform_2, window_bounds = array<i64: 1, 2, 16>}, {transform_indices = @transform_3, window_bounds = array<i64: 1, 16, 2>}, {transform_indices = @transform_4, window_bounds = array<i64: 1, 16, 16>}, {transform_indices = @transform_5, window_bounds = array<i64: 1, 2, 16>}, {transform_indices = @transform_6, window_bounds = array<i64: 1, 16, 2>}]} {
    %c0 = arith.constant 0 : index
    %c0_0 = arith.constant 0 : index
    %0 = vector.load %arg2[%c0, %c0_0] : memref<16x8xf32, #tpu.memory_space<vmem>>, vector<16x8xf32>
    %1 = arith.truncf %0 : vector<16x8xf32> to vector<16x8xbf16>
    %c0_1 = arith.constant 0 : index
    %c0_2 = arith.constant 0 : index
    %c0_3 = arith.constant 0 : index
    %2 = vector.load %arg3[%c0_1, %c0_2, %c0_3] : memref<1x8x16xbf16, #tpu.memory_space<vmem>>, vector<1x8x16xbf16>
    %3 = vector.shape_cast %2 : vector<1x8x16xbf16> to vector<8x16xbf16>
    %cst = arith.constant dense<0.000000e+00> : vector<16x16xf32>
    %4 = tpu.matmul %1, %3, %cst {dimension_numbers = #tpu.dot_dimension_numbers<[1], [0], [0], [1], [0, 0, 1, 1], [], []>} : vector<16x8xbf16>, vector<8x16xbf16>, vector<16x16xf32> -> vector<16x16xf32>
    %c0_4 = arith.constant 0 : index
    %c0_5 = arith.constant 0 : index
    %c0_6 = arith.constant 0 : index
    %5 = vector.load %arg4[%c0_4, %c0_5, %c0_6] : memref<1x2x16xf32, #tpu.memory_space<vmem>>, vector<1x2x16xf32>
    %6 = vector.shape_cast %5 : vector<1x2x16xf32> to vector<2x16xf32>
    %cst_7 = arith.constant dense<0.000000e+00> : vector<2x16xf32>
    %7 = tpu.matmul %6, %4, %cst_7 {dimension_numbers = #tpu.dot_dimension_numbers<[1], [1], [0], [0], [0, 0, 1, 0], [], []>} : vector<2x16xf32>, vector<16x16xf32>, vector<2x16xf32> -> vector<2x16xf32>
    %c0_8 = arith.constant 0 : index
    %c0_9 = arith.constant 0 : index
    %c0_10 = arith.constant 0 : index
    %8 = vector.load %arg7[%c0_8, %c0_9, %c0_10] : memref<1x2x16xf32, #tpu.memory_space<vmem>>, vector<1x2x16xf32>
    %9 = vector.shape_cast %8 : vector<1x2x16xf32> to vector<2x16xf32>
    %10 = vector.shape_cast %7 : vector<2x16xf32> to vector<1x2x16xf32>
    tpu.vector_store %arg7[%c0_8, %c0_9, %c0_10], %10 {strides = array<i32>} : memref<1x2x16xf32, #tpu.memory_space<vmem>>, vector<1x2x16xf32>,
    %c0_11 = arith.constant 0 : index
    %c0_12 = arith.constant 0 : index
    %c0_13 = arith.constant 0 : index
    %11 = vector.load %arg5[%c0_11, %c0_12, %c0_13] : memref<1x16x2xf32, #tpu.memory_space<vmem>>, vector<1x16x2xf32>
    %12 = vector.shape_cast %11 : vector<1x16x2xf32> to vector<16x2xf32>
    %cst_14 = arith.constant dense<0.000000e+00> : vector<16x2xf32>
    %13 = tpu.matmul %4, %12, %cst_14 {dimension_numbers = #tpu.dot_dimension_numbers<[1], [0], [0], [1], [0, 0, 1, 1], [], []>} : vector<16x16xf32>, vector<16x2xf32>, vector<16x2xf32> -> vector<16x2xf32>
    %c0_15 = arith.constant 0 : index
    %c0_16 = arith.constant 0 : index
    %c0_17 = arith.constant 0 : index
    %14 = vector.load %arg8[%c0_15, %c0_16, %c0_17] : memref<1x16x2xf32, #tpu.memory_space<vmem>>, vector<1x16x2xf32>
    %15 = vector.shape_cast %14 : vector<1x16x2xf32> to vector<16x2xf32>
    %16 = vector.shape_cast %13 : vector<16x2xf32> to vector<1x16x2xf32>
    tpu.vector_store %arg8[%c0_15, %c0_16, %c0_17], %16 {strides = array<i32>} : memref<1x16x2xf32, #tpu.memory_space<vmem>>, vector<1x16x2xf32>,
    %17 = arith.truncf %4 : vector<16x16xf32> to vector<16x16xbf16>
    %c0_18 = arith.constant 0 : index
    %c0_19 = arith.constant 0 : index
    %c0_20 = arith.constant 0 : index
    %18 = vector.load %arg6[%c0_18, %c0_19, %c0_20] : memref<1x16x16xbf16, #tpu.memory_space<vmem>>, vector<1x16x16xbf16>
    %19 = vector.shape_cast %18 : vector<1x16x16xbf16> to vector<16x16xbf16>
    %20 = vector.shape_cast %17 : vector<16x16xbf16> to vector<1x16x16xbf16>
    tpu.vector_store %arg6[%c0_18, %c0_19, %c0_20], %20 {strides = array<i32>} : memref<1x16x16xbf16, #tpu.memory_space<vmem>>, vector<1x16x16xbf16>,
    return
  }
  func.func @transform_0(%arg0: i32, %arg1: i32) -> (i32, i32) {
    %c0_i32 = arith.constant 0 : i32
    %c0_i32_0 = arith.constant 0 : i32
    return %arg1, %c0_i32 : i32, i32
  }
  func.func @transform_1(%arg0: i32, %arg1: i32) -> (i32, i32, i32) {
    %c0_i32 = arith.constant 0 : i32
    %c0_i32_0 = arith.constant 0 : i32
    %c0_i32_1 = arith.constant 0 : i32
    return %arg0, %c0_i32, %c0_i32_0 : i32, i32, i32
  }
  func.func @transform_2(%arg0: i32, %arg1: i32) -> (i32, i32, i32) {
    %c0_i32 = arith.constant 0 : i32
    %c0_i32_0 = arith.constant 0 : i32
    %c0_i32_1 = arith.constant 0 : i32
    return %arg0, %c0_i32, %c0_i32_0 : i32, i32, i32
  }
  func.func @transform_3(%arg0: i32, %arg1: i32) -> (i32, i32, i32) {
    %c0_i32 = arith.constant 0 : i32
    %c0_i32_0 = arith.constant 0 : i32
    %c0_i32_1 = arith.constant 0 : i32
    return %arg0, %c0_i32, %c0_i32_0 : i32, i32, i32
  }
  func.func @transform_4(%arg0: i32, %arg1: i32) -> (i32, i32, i32) {
    %c0_i32 = arith.constant 0 : i32
    %c0_i32_0 = arith.constant 0 : i32
    return %arg0, %arg1, %c0_i32 : i32, i32, i32
  }
  func.func @transform_5(%arg0: i32, %arg1: i32) -> (i32, i32, i32) {
    %c0_i32 = arith.constant 0 : i32
    %c0_i32_0 = arith.constant 0 : i32
    return %arg0, %c0_i32, %arg1 : i32, i32, i32
  }
  func.func @transform_6(%arg0: i32, %arg1: i32) -> (i32, i32, i32) {
    %c0_i32 = arith.constant 0 : i32
    %c0_i32_0 = arith.constant 0 : i32
    return %arg0, %arg1, %c0_i32 : i32, i32, i32
  }
}

module attributes {stable_mosaic.version = 11 : i64} {
  func.func @_gat_attn_kernel(%arg0: i32, %arg1: i32, %arg2: memref<1x16x16xi8, #tpu.memory_space<vmem>>, %arg3: memref<1x16x16xbf16, #tpu.memory_space<vmem>>, %arg4: memref<1x2x16xf32, #tpu.memory_space<vmem>>, %arg5: memref<1x16x2xf32, #tpu.memory_space<vmem>>, %arg6: memref<1x1x16xf32, #tpu.memory_space<vmem>>, %arg7: memref<1x16x16xf32, #tpu.memory_space<vmem>>) attributes {dimension_semantics = [#tpu.dimension_semantics<parallel>, #tpu.dimension_semantics<parallel>], iteration_bounds = array<i64: 1, 1>, scalar_prefetch = 0 : i64, scratch_operands = 0 : i64, tpu.core_type = #tpu.core_type<tc>, window_params = [{transform_indices = @transform_0, window_bounds = array<i64: 1, 16, 16>}, {transform_indices = @transform_1, window_bounds = array<i64: 1, 16, 16>}, {transform_indices = @transform_2, window_bounds = array<i64: 1, 2, 16>}, {transform_indices = @transform_3, window_bounds = array<i64: 1, 16, 2>}, {transform_indices = @transform_4, window_bounds = array<i64: 1, 1, 16>}, {transform_indices = @transform_5, window_bounds = array<i64: 1, 16, 16>}]} {
    %c0 = arith.constant 0 : index
    %c0_0 = arith.constant 0 : index
    %c0_1 = arith.constant 0 : index
    %0 = vector.load %arg2[%c0, %c0_0, %c0_1] : memref<1x16x16xi8, #tpu.memory_space<vmem>>, vector<1x16x16xi8>
    %1 = vector.shape_cast %0 : vector<1x16x16xi8> to vector<16x16xi8>
    %2 = arith.sitofp %1 : vector<16x16xi8> to vector<16x16xf32>
    %cst = arith.constant 1.000000e+00 : f32
    %3 = vector.broadcast %cst : f32 to vector<16x16xf32>
    %4 = arith.subf %2, %3 : vector<16x16xf32>
    %cst_2 = arith.constant 1.000000e+30 : f32
    %5 = vector.broadcast %cst_2 : f32 to vector<16x16xf32>
    %6 = arith.mulf %4, %5 : vector<16x16xf32>
    %cst_3 = arith.constant dense<0xFF800000> : vector<16xf32>
    %7 = vector.multi_reduction <maximumf>, %2, %cst_3 [1] : vector<16x16xf32> to vector<16xf32>
    %8 = vector.shape_cast %7 : vector<16xf32> to vector<16x1xf32>
    %cst_4 = arith.constant 5.000000e-01 : f32
    %9 = vector.broadcast %cst_4 : f32 to vector<16x1xf32>
    %10 = arith.cmpf ogt, %8, %9 : vector<16x1xf32>
    %c0_5 = arith.constant 0 : index
    %c0_6 = arith.constant 0 : index
    %c0_7 = arith.constant 0 : index
    %11 = vector.load %arg5[%c0_5, %c0_6, %c0_7] : memref<1x16x2xf32, #tpu.memory_space<vmem>>, vector<1x16x2xf32>
    %12 = vector.shape_cast %11 : vector<1x16x2xf32> to vector<16x2xf32>
    %c0_8 = arith.constant 0 : index
    %c0_9 = arith.constant 0 : index
    %c0_10 = arith.constant 0 : index
    %13 = vector.load %arg3[%c0_8, %c0_9, %c0_10] : memref<1x16x16xbf16, #tpu.memory_space<vmem>>, vector<1x16x8xbf16>
    %14 = vector.shape_cast %13 : vector<1x16x8xbf16> to vector<16x8xbf16>
    %c0_11 = arith.constant 0 : index
    %c0_12 = arith.constant 0 : index
    %c0_13 = arith.constant 0 : index
    %15 = vector.load %arg4[%c0_11, %c0_12, %c0_13] : memref<1x2x16xf32, #tpu.memory_space<vmem>>, vector<1x1x16xf32>
    %16 = vector.shape_cast %15 : vector<1x1x16xf32> to vector<1x16xf32>
    %17 = vector.extract_strided_slice %12 {offsets = [0, 0], sizes = [16, 1], strides = [1, 1]} : vector<16x2xf32> to vector<16x1xf32>
    %18 = vector.broadcast %17 : vector<16x1xf32> to vector<16x16xf32>
    %19 = vector.broadcast %16 : vector<1x16xf32> to vector<16x16xf32>
    %20 = arith.addf %18, %19 : vector<16x16xf32>
    %cst_14 = arith.constant 2.000000e-01 : f32
    %21 = vector.broadcast %cst_14 : f32 to vector<16x16xf32>
    %22 = arith.mulf %21, %20 : vector<16x16xf32>
    %23 = arith.maximumf %20, %22 : vector<16x16xf32>
    %24 = arith.addf %23, %6 : vector<16x16xf32>
    %cst_15 = arith.constant dense<0xFF800000> : vector<16xf32>
    %25 = vector.multi_reduction <maximumf>, %24, %cst_15 [1] : vector<16x16xf32> to vector<16xf32>
    %26 = vector.shape_cast %25 : vector<16xf32> to vector<16x1xf32>
    %27 = vector.broadcast %26 : vector<16x1xf32> to vector<16x16xf32>
    %28 = arith.subf %24, %27 : vector<16x16xf32>
    %29 = math.exp %28 : vector<16x16xf32>
    %cst_16 = arith.constant dense<0.000000e+00> : vector<16xf32>
    %30 = vector.multi_reduction <add>, %29, %cst_16 [1] : vector<16x16xf32> to vector<16xf32>
    %31 = vector.shape_cast %30 : vector<16xf32> to vector<16x1xf32>
    %32 = arith.truncf %29 : vector<16x16xf32> to vector<16x16xbf16>
    %cst_17 = arith.constant dense<0.000000e+00> : vector<16x8xf32>
    %33 = tpu.matmul %32, %14, %cst_17 {dimension_numbers = #tpu.dot_dimension_numbers<[1], [0], [0], [1], [0, 0, 1, 1], [], []>} : vector<16x16xbf16>, vector<16x8xbf16>, vector<16x8xf32> -> vector<16x8xf32>
    %34 = tpu.reciprocal %31 {approx = true} : vector<16x1xf32> -> vector<16x1xf32>
    %35 = vector.broadcast %34 : vector<16x1xf32> to vector<16x8xf32>
    %36 = arith.mulf %33, %35 : vector<16x8xf32>
    %cst_18 = arith.constant 0.000000e+00 : f32
    %37 = vector.shape_cast %10 : vector<16x1xi1> to vector<16x1xi1>
    %38 = vector.broadcast %37 : vector<16x1xi1> to vector<16x8xi1>
    %39 = vector.broadcast %cst_18 : f32 to vector<16x8xf32>
    %40 = arith.select %38, %36, %39 : vector<16x8xi1>, vector<16x8xf32>
    %c0_19 = arith.constant 0 : index
    %c0_20 = arith.constant 0 : index
    %c8 = arith.constant 8 : index
    %41 = vector.load %arg3[%c0_19, %c0_20, %c8] : memref<1x16x16xbf16, #tpu.memory_space<vmem>>, vector<1x16x8xbf16>
    %42 = vector.shape_cast %41 : vector<1x16x8xbf16> to vector<16x8xbf16>
    %c0_21 = arith.constant 0 : index
    %c1 = arith.constant 1 : index
    %c0_22 = arith.constant 0 : index
    %43 = vector.load %arg4[%c0_21, %c1, %c0_22] : memref<1x2x16xf32, #tpu.memory_space<vmem>>, vector<1x1x16xf32>
    %44 = vector.shape_cast %43 : vector<1x1x16xf32> to vector<1x16xf32>
    %45 = vector.extract_strided_slice %12 {offsets = [0, 1], sizes = [16, 1], strides = [1, 1]} : vector<16x2xf32> to vector<16x1xf32>
    %46 = vector.broadcast %45 : vector<16x1xf32> to vector<16x16xf32>
    %47 = vector.broadcast %44 : vector<1x16xf32> to vector<16x16xf32>
    %48 = arith.addf %46, %47 : vector<16x16xf32>
    %cst_23 = arith.constant 2.000000e-01 : f32
    %49 = vector.broadcast %cst_23 : f32 to vector<16x16xf32>
    %50 = arith.mulf %49, %48 : vector<16x16xf32>
    %51 = arith.maximumf %48, %50 : vector<16x16xf32>
    %52 = arith.addf %51, %6 : vector<16x16xf32>
    %cst_24 = arith.constant dense<0xFF800000> : vector<16xf32>
    %53 = vector.multi_reduction <maximumf>, %52, %cst_24 [1] : vector<16x16xf32> to vector<16xf32>
    %54 = vector.shape_cast %53 : vector<16xf32> to vector<16x1xf32>
    %55 = vector.broadcast %54 : vector<16x1xf32> to vector<16x16xf32>
    %56 = arith.subf %52, %55 : vector<16x16xf32>
    %57 = math.exp %56 : vector<16x16xf32>
    %cst_25 = arith.constant dense<0.000000e+00> : vector<16xf32>
    %58 = vector.multi_reduction <add>, %57, %cst_25 [1] : vector<16x16xf32> to vector<16xf32>
    %59 = vector.shape_cast %58 : vector<16xf32> to vector<16x1xf32>
    %60 = arith.truncf %57 : vector<16x16xf32> to vector<16x16xbf16>
    %cst_26 = arith.constant dense<0.000000e+00> : vector<16x8xf32>
    %61 = tpu.matmul %60, %42, %cst_26 {dimension_numbers = #tpu.dot_dimension_numbers<[1], [0], [0], [1], [0, 0, 1, 1], [], []>} : vector<16x16xbf16>, vector<16x8xbf16>, vector<16x8xf32> -> vector<16x8xf32>
    %62 = tpu.reciprocal %59 {approx = true} : vector<16x1xf32> -> vector<16x1xf32>
    %63 = vector.broadcast %62 : vector<16x1xf32> to vector<16x8xf32>
    %64 = arith.mulf %61, %63 : vector<16x8xf32>
    %cst_27 = arith.constant 0.000000e+00 : f32
    %65 = vector.shape_cast %10 : vector<16x1xi1> to vector<16x1xi1>
    %66 = vector.broadcast %65 : vector<16x1xi1> to vector<16x8xi1>
    %67 = vector.broadcast %cst_27 : f32 to vector<16x8xf32>
    %68 = arith.select %66, %64, %67 : vector<16x8xi1>, vector<16x8xf32>
    %69 = tpu.concatenate %40, %68 in 1 : vector<16x8xf32>, vector<16x8xf32> -> vector<16x16xf32>
    %c0_28 = arith.constant 0 : index
    %c0_29 = arith.constant 0 : index
    %c0_30 = arith.constant 0 : index
    %70 = vector.load %arg6[%c0_28, %c0_29, %c0_30] : memref<1x1x16xf32, #tpu.memory_space<vmem>>, vector<1x1x16xf32>
    %71 = vector.shape_cast %70 : vector<1x1x16xf32> to vector<1x16xf32>
    %72 = vector.broadcast %71 : vector<1x16xf32> to vector<16x16xf32>
    %73 = arith.addf %69, %72 : vector<16x16xf32>
    %cst_31 = arith.constant 0.000000e+00 : f32
    %74 = vector.broadcast %cst_31 : f32 to vector<16x16xf32>
    %75 = arith.cmpf ogt, %73, %74 : vector<16x16xf32>
    %cst_32 = arith.constant 0.000000e+00 : f32
    %76 = vector.broadcast %cst_32 : f32 to vector<16x16xf32>
    %77 = arith.minimumf %73, %76 : vector<16x16xf32>
    %78 = math.exp %77 : vector<16x16xf32>
    %cst_33 = arith.constant 1.000000e+00 : f32
    %79 = vector.broadcast %cst_33 : f32 to vector<16x16xf32>
    %80 = arith.subf %78, %79 : vector<16x16xf32>
    %81 = arith.select %75, %73, %80 : vector<16x16xi1>, vector<16x16xf32>
    %c0_34 = arith.constant 0 : index
    %c0_35 = arith.constant 0 : index
    %c0_36 = arith.constant 0 : index
    %82 = vector.load %arg7[%c0_34, %c0_35, %c0_36] : memref<1x16x16xf32, #tpu.memory_space<vmem>>, vector<1x16x16xf32>
    %83 = vector.shape_cast %82 : vector<1x16x16xf32> to vector<16x16xf32>
    %84 = vector.shape_cast %81 : vector<16x16xf32> to vector<1x16x16xf32>
    tpu.vector_store %arg7[%c0_34, %c0_35, %c0_36], %84 {strides = array<i32>} : memref<1x16x16xf32, #tpu.memory_space<vmem>>, vector<1x16x16xf32>,
    return
  }
  func.func @transform_0(%arg0: i32, %arg1: i32) -> (i32, i32, i32) {
    %c0_i32 = arith.constant 0 : i32
    %c0_i32_0 = arith.constant 0 : i32
    return %arg0, %arg1, %c0_i32 : i32, i32, i32
  }
  func.func @transform_1(%arg0: i32, %arg1: i32) -> (i32, i32, i32) {
    %c0_i32 = arith.constant 0 : i32
    %c0_i32_0 = arith.constant 0 : i32
    %c0_i32_1 = arith.constant 0 : i32
    return %arg0, %c0_i32, %c0_i32_0 : i32, i32, i32
  }
  func.func @transform_2(%arg0: i32, %arg1: i32) -> (i32, i32, i32) {
    %c0_i32 = arith.constant 0 : i32
    %c0_i32_0 = arith.constant 0 : i32
    %c0_i32_1 = arith.constant 0 : i32
    return %arg0, %c0_i32, %c0_i32_0 : i32, i32, i32
  }
  func.func @transform_3(%arg0: i32, %arg1: i32) -> (i32, i32, i32) {
    %c0_i32 = arith.constant 0 : i32
    %c0_i32_0 = arith.constant 0 : i32
    return %arg0, %arg1, %c0_i32 : i32, i32, i32
  }
  func.func @transform_4(%arg0: i32, %arg1: i32) -> (i32, i32, i32) {
    %c0_i32 = arith.constant 0 : i32
    %c0_i32_0 = arith.constant 0 : i32
    %c0_i32_1 = arith.constant 0 : i32
    return %arg0, %c0_i32, %c0_i32_0 : i32, i32, i32
  }
  func.func @transform_5(%arg0: i32, %arg1: i32) -> (i32, i32, i32) {
    %c0_i32 = arith.constant 0 : i32
    %c0_i32_0 = arith.constant 0 : i32
    return %arg0, %arg1, %c0_i32 : i32, i32, i32
  }
}

module attributes {stable_mosaic.version = 11 : i64} {
  func.func @_proj_kernel(%arg0: i32, %arg1: i32, %arg2: memref<16x16xf32, #tpu.memory_space<vmem>>, %arg3: memref<1x16x16xbf16, #tpu.memory_space<vmem>>, %arg4: memref<1x2x16xf32, #tpu.memory_space<vmem>>, %arg5: memref<1x16x2xf32, #tpu.memory_space<vmem>>, %arg6: memref<1x16x16xbf16, #tpu.memory_space<vmem>>, %arg7: memref<1x2x16xf32, #tpu.memory_space<vmem>>, %arg8: memref<1x16x2xf32, #tpu.memory_space<vmem>>) attributes {dimension_semantics = [#tpu.dimension_semantics<parallel>, #tpu.dimension_semantics<parallel>], iteration_bounds = array<i64: 1, 1>, scalar_prefetch = 0 : i64, scratch_operands = 0 : i64, tpu.core_type = #tpu.core_type<tc>, window_params = [{transform_indices = @transform_0, window_bounds = array<i64: 16, 16>}, {transform_indices = @transform_1, window_bounds = array<i64: 1, 16, 16>}, {transform_indices = @transform_2, window_bounds = array<i64: 1, 2, 16>}, {transform_indices = @transform_3, window_bounds = array<i64: 1, 16, 2>}, {transform_indices = @transform_4, window_bounds = array<i64: 1, 16, 16>}, {transform_indices = @transform_5, window_bounds = array<i64: 1, 2, 16>}, {transform_indices = @transform_6, window_bounds = array<i64: 1, 16, 2>}]} {
    %c0 = arith.constant 0 : index
    %c0_0 = arith.constant 0 : index
    %0 = vector.load %arg2[%c0, %c0_0] : memref<16x16xf32, #tpu.memory_space<vmem>>, vector<16x16xf32>
    %1 = arith.truncf %0 : vector<16x16xf32> to vector<16x16xbf16>
    %c0_1 = arith.constant 0 : index
    %c0_2 = arith.constant 0 : index
    %c0_3 = arith.constant 0 : index
    %2 = vector.load %arg3[%c0_1, %c0_2, %c0_3] : memref<1x16x16xbf16, #tpu.memory_space<vmem>>, vector<1x16x16xbf16>
    %3 = vector.shape_cast %2 : vector<1x16x16xbf16> to vector<16x16xbf16>
    %cst = arith.constant dense<0.000000e+00> : vector<16x16xf32>
    %4 = tpu.matmul %1, %3, %cst {dimension_numbers = #tpu.dot_dimension_numbers<[1], [0], [0], [1], [0, 0, 1, 1], [], []>} : vector<16x16xbf16>, vector<16x16xbf16>, vector<16x16xf32> -> vector<16x16xf32>
    %c0_4 = arith.constant 0 : index
    %c0_5 = arith.constant 0 : index
    %c0_6 = arith.constant 0 : index
    %5 = vector.load %arg4[%c0_4, %c0_5, %c0_6] : memref<1x2x16xf32, #tpu.memory_space<vmem>>, vector<1x2x16xf32>
    %6 = vector.shape_cast %5 : vector<1x2x16xf32> to vector<2x16xf32>
    %cst_7 = arith.constant dense<0.000000e+00> : vector<2x16xf32>
    %7 = tpu.matmul %6, %4, %cst_7 {dimension_numbers = #tpu.dot_dimension_numbers<[1], [1], [0], [0], [0, 0, 1, 0], [], []>} : vector<2x16xf32>, vector<16x16xf32>, vector<2x16xf32> -> vector<2x16xf32>
    %c0_8 = arith.constant 0 : index
    %c0_9 = arith.constant 0 : index
    %c0_10 = arith.constant 0 : index
    %8 = vector.load %arg7[%c0_8, %c0_9, %c0_10] : memref<1x2x16xf32, #tpu.memory_space<vmem>>, vector<1x2x16xf32>
    %9 = vector.shape_cast %8 : vector<1x2x16xf32> to vector<2x16xf32>
    %10 = vector.shape_cast %7 : vector<2x16xf32> to vector<1x2x16xf32>
    tpu.vector_store %arg7[%c0_8, %c0_9, %c0_10], %10 {strides = array<i32>} : memref<1x2x16xf32, #tpu.memory_space<vmem>>, vector<1x2x16xf32>,
    %c0_11 = arith.constant 0 : index
    %c0_12 = arith.constant 0 : index
    %c0_13 = arith.constant 0 : index
    %11 = vector.load %arg5[%c0_11, %c0_12, %c0_13] : memref<1x16x2xf32, #tpu.memory_space<vmem>>, vector<1x16x2xf32>
    %12 = vector.shape_cast %11 : vector<1x16x2xf32> to vector<16x2xf32>
    %cst_14 = arith.constant dense<0.000000e+00> : vector<16x2xf32>
    %13 = tpu.matmul %4, %12, %cst_14 {dimension_numbers = #tpu.dot_dimension_numbers<[1], [0], [0], [1], [0, 0, 1, 1], [], []>} : vector<16x16xf32>, vector<16x2xf32>, vector<16x2xf32> -> vector<16x2xf32>
    %c0_15 = arith.constant 0 : index
    %c0_16 = arith.constant 0 : index
    %c0_17 = arith.constant 0 : index
    %14 = vector.load %arg8[%c0_15, %c0_16, %c0_17] : memref<1x16x2xf32, #tpu.memory_space<vmem>>, vector<1x16x2xf32>
    %15 = vector.shape_cast %14 : vector<1x16x2xf32> to vector<16x2xf32>
    %16 = vector.shape_cast %13 : vector<16x2xf32> to vector<1x16x2xf32>
    tpu.vector_store %arg8[%c0_15, %c0_16, %c0_17], %16 {strides = array<i32>} : memref<1x16x2xf32, #tpu.memory_space<vmem>>, vector<1x16x2xf32>,
    %17 = arith.truncf %4 : vector<16x16xf32> to vector<16x16xbf16>
    %c0_18 = arith.constant 0 : index
    %c0_19 = arith.constant 0 : index
    %c0_20 = arith.constant 0 : index
    %18 = vector.load %arg6[%c0_18, %c0_19, %c0_20] : memref<1x16x16xbf16, #tpu.memory_space<vmem>>, vector<1x16x16xbf16>
    %19 = vector.shape_cast %18 : vector<1x16x16xbf16> to vector<16x16xbf16>
    %20 = vector.shape_cast %17 : vector<16x16xbf16> to vector<1x16x16xbf16>
    tpu.vector_store %arg6[%c0_18, %c0_19, %c0_20], %20 {strides = array<i32>} : memref<1x16x16xbf16, #tpu.memory_space<vmem>>, vector<1x16x16xbf16>,
    return
  }
  func.func @transform_0(%arg0: i32, %arg1: i32) -> (i32, i32) {
    %c0_i32 = arith.constant 0 : i32
    %c0_i32_0 = arith.constant 0 : i32
    return %arg1, %c0_i32 : i32, i32
  }
  func.func @transform_1(%arg0: i32, %arg1: i32) -> (i32, i32, i32) {
    %c0_i32 = arith.constant 0 : i32
    %c0_i32_0 = arith.constant 0 : i32
    %c0_i32_1 = arith.constant 0 : i32
    return %arg0, %c0_i32, %c0_i32_0 : i32, i32, i32
  }
  func.func @transform_2(%arg0: i32, %arg1: i32) -> (i32, i32, i32) {
    %c0_i32 = arith.constant 0 : i32
    %c0_i32_0 = arith.constant 0 : i32
    %c0_i32_1 = arith.constant 0 : i32
    return %arg0, %c0_i32, %c0_i32_0 : i32, i32, i32
  }
  func.func @transform_3(%arg0: i32, %arg1: i32) -> (i32, i32, i32) {
    %c0_i32 = arith.constant 0 : i32
    %c0_i32_0 = arith.constant 0 : i32
    %c0_i32_1 = arith.constant 0 : i32
    return %arg0, %c0_i32, %c0_i32_0 : i32, i32, i32
  }
  func.func @transform_4(%arg0: i32, %arg1: i32) -> (i32, i32, i32) {
    %c0_i32 = arith.constant 0 : i32
    %c0_i32_0 = arith.constant 0 : i32
    return %arg0, %arg1, %c0_i32 : i32, i32, i32
  }
  func.func @transform_5(%arg0: i32, %arg1: i32) -> (i32, i32, i32) {
    %c0_i32 = arith.constant 0 : i32
    %c0_i32_0 = arith.constant 0 : i32
    return %arg0, %c0_i32, %arg1 : i32, i32, i32
  }
  func.func @transform_6(%arg0: i32, %arg1: i32) -> (i32, i32, i32) {
    %c0_i32 = arith.constant 0 : i32
    %c0_i32_0 = arith.constant 0 : i32
    return %arg0, %arg1, %c0_i32 : i32, i32, i32
  }
}

module attributes {stable_mosaic.version = 11 : i64} {
  func.func @_linear_kernel(%arg0: i32, %arg1: memref<16x16xf32, #tpu.memory_space<vmem>>, %arg2: memref<16x4xbf16, #tpu.memory_space<vmem>>, %arg3: memref<1x4xf32, #tpu.memory_space<vmem>>, %arg4: memref<16x4xf32, #tpu.memory_space<vmem>>) attributes {dimension_semantics = [#tpu.dimension_semantics<parallel>], iteration_bounds = array<i64: 1>, scalar_prefetch = 0 : i64, scratch_operands = 0 : i64, tpu.core_type = #tpu.core_type<tc>, window_params = [{transform_indices = @transform_0, window_bounds = array<i64: 16, 16>}, {pipeline_mode = #tpu.pipeline_mode<synchronous>, transform_indices = @transform_1, window_bounds = array<i64: 16, 4>}, {pipeline_mode = #tpu.pipeline_mode<synchronous>, transform_indices = @transform_2, window_bounds = array<i64: 1, 4>}, {transform_indices = @transform_3, window_bounds = array<i64: 16, 4>}]} {
    %c0 = arith.constant 0 : index
    %c0_0 = arith.constant 0 : index
    %0 = vector.load %arg1[%c0, %c0_0] : memref<16x16xf32, #tpu.memory_space<vmem>>, vector<16x16xf32>
    %1 = arith.truncf %0 : vector<16x16xf32> to vector<16x16xbf16>
    %c0_1 = arith.constant 0 : index
    %c0_2 = arith.constant 0 : index
    %2 = vector.load %arg2[%c0_1, %c0_2] : memref<16x4xbf16, #tpu.memory_space<vmem>>, vector<16x4xbf16>
    %cst = arith.constant dense<0.000000e+00> : vector<16x4xf32>
    %3 = tpu.matmul %1, %2, %cst {dimension_numbers = #tpu.dot_dimension_numbers<[1], [0], [0], [1], [0, 0, 1, 1], [], []>} : vector<16x16xbf16>, vector<16x4xbf16>, vector<16x4xf32> -> vector<16x4xf32>
    %c0_3 = arith.constant 0 : index
    %c0_4 = arith.constant 0 : index
    %4 = vector.load %arg3[%c0_3, %c0_4] : memref<1x4xf32, #tpu.memory_space<vmem>>, vector<1x4xf32>
    %5 = vector.broadcast %4 : vector<1x4xf32> to vector<16x4xf32>
    %6 = arith.addf %3, %5 : vector<16x4xf32>
    %c0_5 = arith.constant 0 : index
    %c0_6 = arith.constant 0 : index
    %7 = vector.load %arg4[%c0_5, %c0_6] : memref<16x4xf32, #tpu.memory_space<vmem>>, vector<16x4xf32>
    tpu.vector_store %arg4[%c0_5, %c0_6], %6 {strides = array<i32>} : memref<16x4xf32, #tpu.memory_space<vmem>>, vector<16x4xf32>,
    return
  }
  func.func @transform_0(%arg0: i32) -> (i32, i32) {
    %c0_i32 = arith.constant 0 : i32
    %c0_i32_0 = arith.constant 0 : i32
    return %arg0, %c0_i32 : i32, i32
  }
  func.func @transform_1(%arg0: i32) -> (i32, i32) {
    %c0_i32 = arith.constant 0 : i32
    %c0_i32_0 = arith.constant 0 : i32
    %c0_i32_1 = arith.constant 0 : i32
    return %c0_i32, %c0_i32_0 : i32, i32
  }
  func.func @transform_2(%arg0: i32) -> (i32, i32) {
    %c0_i32 = arith.constant 0 : i32
    %c0_i32_0 = arith.constant 0 : i32
    %c0_i32_1 = arith.constant 0 : i32
    return %c0_i32, %c0_i32_0 : i32, i32
  }
  func.func @transform_3(%arg0: i32) -> (i32, i32) {
    %c0_i32 = arith.constant 0 : i32
    %c0_i32_0 = arith.constant 0 : i32
    return %arg0, %c0_i32 : i32, i32
  }
}

</mosaic_0001>

<bundles_post_ra>
// kernel: hoganet_forward.6
= control target key start
LH: loop header
LB: loop body
LE: loop exit
PB: predicated region body
PF: predicated region fallthrough
CT: control target
= control target key end

     0   :  { %v258_v0 = vmov 1   ;;  %v259_v1 = vmov 0   ;;  %s260_s26 = smov 120   ;;  %vm31_vm0 = vcmask 130048   ;;  %vm187_vm3 = vcmask 64512   ;;  %s337_s3 = inlined_call_operand.vmem [shape: f32[1,16,2], index: 3, kind: input, shape index: {}]   ;;  %s338_s2 = inlined_call_operand.vmem [shape: f32[1,2,16], index: 2, kind: input, shape index: {}]   ;;  %s339_s0 = inlined_call_operand.vmem [shape: s8[1,16,16], index: 0, kind: input, shape index: {}]   ;;  %s340_s1 = inlined_call_operand.vmem [shape: bf16[1,16,16], index: 1, kind: input, shape index: {}]   ;;  %s341_s4 = inlined_call_operand.vmem [shape: f32[1,1,16], index: 4, kind: input, shape index: {}]   ;;  %s342_s5 = inlined_call_operand.vmem [shape: f32[1,16,16], index: 5, kind: output, shape index: {}]  }
   0x1   :  { %233 = vset.pattern.permute.xlu0 %v258_v0  ;;  %234 = vset.pattern.permute.xlu1 %v259_v1  ;;  %v40_v2 = vld [vmem:[%s337_s3] sm:$0xff]  ;;  %v41_v3 = vld [vmem:[%s337_s3 + $0x8] sm:$0xff] }
   0x2   :  { %47 = vperm.xlu1 %234, %v40_v2   ;;  %118 = vperm.xlu0 %233, %v40_v2   ;;  %v226_v4 = vld [vmem:[%s339_s0] sm:$0xf]   ;;  %s261_s0 = smov 8  }
   0x3   :  { %v227_v5 = vunpack.c.0.s8 %v226_v4  ;;  %v224_v6 = vld [vmem:[%s340_s1] sm:$0xff]  ;;  %v228_v11 = vunpack.c.1.s8 %v226_v4 }
   0x4   :  { %99 = vmatpush.bf16.msra.mxu0 %v224_v6  ;;  %v235_v8 = vld [vmem:[%s338_s2] ss:$0 sm:$0xff]  ;;  %v236_v9 = vld [vmem:[%s338_s2 + $0x1] ss:$0 sm:$0xff] }
   0x5   :  { %v25_v7 = vcvt.s32.f32 %v227_v5  ;;  %v26_v19 = vcvt.s32.f32 %v228_v11 }
   0x7   :  { %v214_v10 = vadd.f32 -1.0, %v25_v7  ;;  %v215_v24 = vadd.f32 -1.0, %v26_v19  ;;  %v32_v40 = vsel %vm31_vm0, %v25_v7, -inf  ;;  %v35_v41 = vsel %vm31_vm0, %v26_v19, -inf  ;;  %v237_v19 = vld [vmem:[%s341_s4] ss:$0 sm:$0xff] }
   0x9   :  { %v29_v18 = vmul.f32 1e+30, %v214_v10  ;;  %v30_v33 = vmul.f32 1e+30, %v215_v24 }
   0xa   :  { %122 = vperm.xlu0 %233, %v41_v3   ;;  %52 = vperm.xlu1 %234, %v41_v3  }
  0x12   :  { %153 = vrot.lane.b32.xlu0 %v224_v6, %s260_s26 }
  0x74   :  { %v48_v12 = vpop.permute.xlu1 %47  ;;  %v119_v13 = vpop.permute.xlu0 %118 }
  0x75   :  { %v56_v14 = vadd.f32 %v235_v8, %v48_v12  ;;  %v126_v15 = vadd.f32 %v236_v9, %v119_v13 }
  0x77   :  { %v58_v16 = vmul.f32 0.2, %v56_v14  ;;  %v128_v17 = vmul.f32 0.2, %v126_v15 }
  0x79   :  { %v60_v20 = vmax.f32 %v56_v14, %v58_v16  ;;  %v130_v21 = vmax.f32 %v126_v15, %v128_v17 }
  0x7b   :  { %v132_v22 = vadd.f32 %v130_v21, %v29_v18  ;;  %v62_v23 = vadd.f32 %v60_v20, %v29_v18 }
  0x7c   :  { %v123_v25 = vpop.permute.xlu0 %122  ;;  %v53_v26 = vpop.permute.xlu1 %52 }
  0x7d   :  { %v127_v27 = vadd.f32 %v236_v9, %v123_v25  ;;  %v134_v28 = vsel %vm31_vm0, %v132_v22, -inf  ;;  %v64_v29 = vsel %vm31_vm0, %v62_v23, -inf  ;;  %v57_v30 = vadd.f32 %v235_v8, %v53_v26 }
  0x7e   :  { %135 = vmax.xlane.f32.xlu2 %v134_v28  ;;  %65 = vmax.xlane.f32.xlu1 %v64_v29 }
  0x7f   :  { %v129_v31 = vmul.f32 0.2, %v127_v27  ;;  %v59_v32 = vmul.f32 0.2, %v57_v30 }
  0x81   :  { %v131_v34 = vmax.f32 %v127_v27, %v129_v31  ;;  %v61_v35 = vmax.f32 %v57_v30, %v59_v32 }
  0x83   :  { %v133_v36 = vadd.f32 %v131_v34, %v30_v33  ;;  %v63_v38 = vadd.f32 %v61_v35, %v30_v33 }
  0x84   :  { %v154_v42 = vpop.permute.xlu0 %153 }
  0x85   :  { %v137_v37 = vsel %vm31_vm0, %v133_v36, -inf  ;;  %v67_v39 = vsel %vm31_vm0, %v63_v38, -inf  ;;  %166 = vmatpush.bf16.msra.mxu1 %v154_v42 }
  0x86   :  { %138 = vmax.xlane.f32.xlu2 %v137_v37 }
  0x8e   :  { %68 = vmax.xlane.f32.xlu2 %v67_v39 }
  0x96   :  { %33 = vmax.xlane.f32.xlu2 %v32_v40 }
  0x9e   :  { %36 = vmax.xlane.f32.xlu2 %v35_v41 }
  0xf1   :  { %v136_v43 = vpop.xlane.xlu2 %135  ;;  %v66_v46 = vpop.xlane.xlu1 %65 }
  0xf2   :  { %v140_v44 = vsub.f32 %v132_v22, %v136_v43  ;;  %v70_v50 = vsub.f32 %v62_v23, %v66_v46 }
  0xf4   :  { %v142_v45 = vmul.f32 1.442695, %v140_v44  ;;  %v72_v53 = vmul.f32 1.442695, %v70_v50 }
  0xf6   :  { %238 = vpow2.f32 %v142_v45 }
  0xf9   :  { %v139_v47 = vpop.xlane.xlu2 %138 }
  0xfa   :  { %v141_v48 = vsub.f32 %v133_v36, %v139_v47 }
  0xfc   :  { %v239_v49 = vpop.eup %238  ;;  %v144_v51 = vmul.f32 1.442695, %v141_v48 }
  0xfd   :  { %v146_v52 = vsel %vm31_vm0, %v239_v49, 0.0 }
  0xfe   :  { %240 = vpow2.f32 %v144_v51  ;;  %147 = vadd.xlane.f32.xlu0 %v146_v52 }
  0xff   :  { %242 = vpow2.f32 %v72_v53 }
 0x101   :  { %v69_v54 = vpop.xlane.xlu2 %68 }
 0x102   :  { %v71_v55 = vsub.f32 %v63_v38, %v69_v54 }
 0x104   :  { %v241_v56 = vpop.eup %240  ;;  %v74_v57 = vmul.f32 1.442695, %v71_v55 }
 0x105   :  { %v149_v58 = vsel %vm31_vm0, %v241_v56, 0.0  ;;  %v152_v59 = vpack.c.bf16 %v241_v56, %v239_v49  ;;  %v243_v60 = vpop.eup %242 }
 0x106   :  { %244 = vpow2.f32 %v74_v57  ;;  %150 = vadd.xlane.f32.xlu2 %v149_v58  ;;  %v76_v62 = vsel %vm31_vm0, %v243_v60, 0.0 }
 0x107   :  { %221 = vmatmul.msk.bf16.vlgmr.msra.gmra.mxu1 %vm31_vm0, %v152_v59 }
 0x109   :  { %v34_v1 = vpop.xlane.xlu2 %33 }
 0x10a   :  { %vm38_vm1 = vcmp.gt.f32.partialorder %v34_v1, 0.5 }
 0x10c   :  { %v245_v61 = vpop.eup %244 }
 0x10d   :  { %v82_v63 = vpack.c.bf16 %v245_v61, %v243_v60  ;;  %v79_v0 = vsel %vm31_vm0, %v245_v61, 0.0 }
 0x10e   :  { %77 = vadd.xlane.f32.xlu2 %v76_v62 }
 0x10f   :  { %220 = vmatmul.msk.bf16.vlgmr.msra.gmra.mxu0 %vm31_vm0, %v82_v63 }
 0x111   :  { %v37_v2 = vpop.xlane.xlu2 %36 }
 0x112   :  { %vm39_vm2 = vcmp.gt.f32.partialorder %v37_v2, 0.5 }
 0x116   :  { %80 = vadd.xlane.f32.xlu2 %v79_v0 }
 0x171   :  { %v148_v3 = vpop.xlane.xlu0 %147 }
 0x172   :  { %246 = vrcp.f32 %v148_v3 }
 0x178   :  { %v247_v5 = vpop.eup %246 }
 0x179   :  { %v151_v4 = vpop.xlane.xlu2 %150 }
 0x17a   :  { %248 = vrcp.f32 %v151_v4 }
 0x180   :  { %v249_v9 = vpop.eup %248 }
 0x181   :  { %v78_v13 = vpop.xlane.xlu2 %77 }
 0x184   :  { %v168_v6 = vpop.f32.mrf.mxu1 }
 0x185   :  { %v175_v7 = vmul.f32 %v247_v5, %v168_v6 }
 0x187   :  { %v177_v8 = vsel %vm38_vm1, %v175_v7, 0.0 }
 0x188   :  { %181 = vrot.lane.b32.xlu1 %v177_v8, %s261_s0 }
 0x189   :  { %v81_v15 = vpop.xlane.xlu2 %80 }
 0x18a   :  { %250 = vrcp.f32 %v81_v15 }
 0x18b   :  { %252 = vrcp.f32 %v78_v13 }
 0x18c   :  { %v170_v10 = vpop.f32.mrf.mxu1  ;;  %v101_v14 = vpop.f32.mrf.mxu0 }
 0x18d   :  { %v176_v11 = vmul.f32 %v249_v9, %v170_v10 }
 0x18f   :  { %v178_v12 = vsel %vm39_vm2, %v176_v11, 0.0 }
 0x190   :  { %183 = vrot.lane.b32.xlu2 %v178_v12, %s261_s0  ;;  %v251_v17 = vpop.eup %250 }
 0x191   :  { %v253_v26 = vpop.eup %252 }
 0x192   :  { %v108_v27 = vmul.f32 %v253_v26, %v101_v14 }
 0x194   :  { %v103_v16 = vpop.f32.mrf.mxu0  ;;  %v114_v30 = vsel %vm38_vm1, %v108_v27, 0.0 }
 0x195   :  { %v109_v18 = vmul.f32 %v251_v17, %v103_v16 }
 0x197   :  { %v115_v20 = vsel %vm39_vm2, %v109_v18, 0.0 }
 0x1ea   :  { %v184_v21 = vpop.permute.xlu2 %183 }
 0x1eb   :  { %v189_v22 = vsel %vm187_vm3, %v115_v20, %v184_v21 }
 0x1ec   :  { %v195_v23 = vadd.f32 %v237_v19, %v189_v22 }
 0x1ee   :  { %v199_v24 = vmin.f32 %v195_v23, 0.0  ;;  %vm197_vm4 = vcmp.gt.f32.partialorder %v195_v23, 0.0 }
 0x1f0   :  { %v202_v25 = vmul.f32 1.442695, %v199_v24 }
 0x1f2   :  { %254 = vpow2.f32 %v202_v25 }
 0x1f8   :  { %v255_v28 = vpop.eup %254 }
 0x1f9   :  { %v223_v29 = vadd.f32 -1.0, %v255_v28 }
 0x1fa   :  { %v182_v31 = vpop.permute.xlu1 %181 }
 0x1fb   :  { %v207_v32 = vsel %vm197_vm4, %v195_v23, %v223_v29  ;;  %v188_v33 = vsel %vm187_vm3, %v114_v30, %v182_v31 }
 0x1fc   :  { %209 = vst.msk [vmem:[%s342_s5 + $0x8] sm:$0xff] %vm31_vm0, %v207_v32  ;;  %v194_v34 = vadd.f32 %v237_v19, %v188_v33 }
 0x1fe   :  { %v198_v35 = vmin.f32 %v194_v34, 0.0  ;;  %vm196_vm5 = vcmp.gt.f32.partialorder %v194_v34, 0.0 }
 0x200   :  { %v200_v36 = vmul.f32 1.442695, %v198_v35 }
 0x202   :  { %256 = vpow2.f32 %v200_v36 }
 0x208   :  { %v257_v37 = vpop.eup %256 }
 0x209   :  { %v222_v38 = vadd.f32 -1.0, %v257_v37 }
 0x20b   :  { %v206_v39 = vsel %vm196_vm5, %v194_v34, %v222_v38 }
 0x20c   :  { %208 = vst.msk [vmem:[%s342_s5] sm:$0xff] %vm31_vm0, %v206_v39 }

// kernel: hoganet_forward.5
= control target key start
LH: loop header
LB: loop body
LE: loop exit
PB: predicated region body
PF: predicated region fallthrough
CT: control target
= control target key end

     0   :  { %vm29_vm0 = vcmask 1043456   ;;  %vm25_vm1 = vcmask 64512   ;;  %vm48_vm2 = vcmask 130048   ;;  %vm110_vm3 = vcmask 125952   ;;  %s199_s1 = inlined_call_operand.vmem [shape: bf16[1,8,16], index: 1, kind: input, shape index: {}]   ;;  %s200_s0 = inlined_call_operand.vmem [shape: f32[16,8], index: 0, kind: input, shape index: {}]   ;;  %s201_s3 = inlined_call_operand.vmem [shape: f32[1,16,2], index: 3, kind: input, shape index: {}]   ;;  %s202_s4 = inlined_call_operand.vmem [shape: bf16[1,16,16], index: 4, kind: output, shape index: {0}]   ;;  %s203_s2 = inlined_call_operand.vmem [shape: f32[1,2,16], index: 2, kind: input, shape index: {}]   ;;  %s204_s6 = inlined_call_operand.vmem [shape: f32[1,16,2], index: 6, kind: output, shape index: {2}]   ;;  %s205_s5 = inlined_call_operand.vmem [shape: f32[1,2,16], index: 5, kind: output, shape index: {1}]  }
   0x1   :  { %v24_v0 = vld [vmem:[%s199_s1] sm:$0xf]  ;;  %v22_v2 = vld [vmem:[%s200_s0 + $0x8] sm:$0xff]  ;;  %vm105_vm4 = vcmask 15360   ;;  %vm78_vm5 = vcmask 123904  }
   0x2   :  { %v21_v1 = vld [vmem:[%s200_s0] sm:$0xff]  ;;  %v31_v3 = vsel %vm29_vm0, %v24_v0, 0  ;;  %v81_v5 = vld [vmem:[%s201_s3 + $0x8] sm:$0xff] }
   0x3   :  { %v23_v4 = vpack.c.bf16 %v22_v2, %v21_v1  ;;  %40 = vmatpush.bf16.msra.mxu0 %v31_v3  ;;  %96 = vmatpush.msra.mxu2 %v81_v5  ;;  %v80_v6 = vld [vmem:[%s201_s3] sm:$0xff] }
   0x4   :  { %v47_v11 = vld [vmem:[%s203_s2] sm:$0x3] }
   0x5   :  { %97 = vmatpush.msra.mxu2 %v80_v6 }
   0x6   :  { %125 = vmatmul.msk.bf16.vlgmr.msra.gmra.mxu0 %vm25_vm1, %v23_v4 }
  0x83   :  { %v42_v7 = vpop.f32.mrf.mxu0 }
  0x84   :  { %v108_v8 = vpack.c.bf16 %v42_v7, %v42_v7  ;;  %129 = vmatmul.msk.f32.vlgmr.msra.gmra.mxu2 %vm48_vm2, %v42_v7 }
  0x86   :  { %111 = vst.msk [vmem:[%s202_s4] sm:$0xf] %vm110_vm3, %v108_v8 }
  0x8b   :  { %v44_v9 = vpop.f32.mrf.mxu0 }
  0x8c   :  { %v109_v10 = vpack.c.bf16 %v44_v9, %v44_v9  ;;  %126 = vmatpush.xpose.msk.msra.mxu1 %vm48_vm2, %v44_v9  ;;  %130 = vmatmul.msk.f32.gmra.mxu2 %vm48_vm2, %v44_v9 }
  0x8e   :  { %112 = vst.msk [vmem:[%s202_s4 + $0x4] sm:$0xf] %vm110_vm3, %v109_v10 }
  0x90   :  { %127 = vmatpush.xpose.msk.msra.mxu1 %vm48_vm2, %v42_v7 }
  0x93   :  { %128 = vmatmul.msk.f32.vlgmr.msra.gmra.mxu1 %vm48_vm2, %v47_v11 }
 0x107   :  { %v99_v12 = vpop.f32.mrf.mxu2 }
 0x108   :  { %106 = vst.msk [vmem:[%s204_s6] sm:$0xff] %vm105_vm4, %v99_v12 }
 0x10f   :  { %v102_v13 = vpop.f32.mrf.mxu2 }
 0x110   :  { %107 = vst.msk [vmem:[%s204_s6 + $0x8] sm:$0xff] %vm105_vm4, %v102_v13  ;;  %v75_v14 = vpop.f32.mrf.mxu1 }
 0x111   :  { %79 = vst.msk [vmem:[%s205_s5] sm:$0x3] %vm78_vm5, %v75_v14 }

// kernel: hoganet_forward.9
= control target key start
LH: loop header
LB: loop body
LE: loop exit
PB: predicated region body
PF: predicated region fallthrough
CT: control target
= control target key end

     0   :  { %vm30_vm0 = vcmask 130048   ;;  %vm48_vm1 = vcmask 31744   ;;  %s100_s1 = inlined_call_operand.vmem [shape: bf16[16,4], index: 1, kind: input, shape index: {}]   ;;  %s101_s0 = inlined_call_operand.vmem [shape: f32[16,16], index: 0, kind: input, shape index: {}]   ;;  %s102_s2 = inlined_call_operand.vmem [shape: f32[1,4], index: 2, kind: input, shape index: {}]   ;;  %s103_s3 = inlined_call_operand.vmem [shape: f32[16,4], index: 3, kind: output, shape index: {}]  }
   0x1   :  { %v60_v0 = vld [vmem:[%s100_s1] sm:$0xff]  ;;  %v16_v2 = vld [vmem:[%s101_s0 + $0x8] sm:$0xff] }
   0x2   :  { %v15_v1 = vld [vmem:[%s101_s0] sm:$0xff]  ;;  %41 = vmatpush.bf16.msra.mxu0 %v60_v0 }
   0x3   :  { %v17_v3 = vpack.c.bf16 %v16_v2, %v15_v1  ;;  %v61_v4 = vld [vmem:[%s102_s2] ss:$0 sm:$0xff] }
   0x5   :  { %59 = vmatmul.msk.bf16.vlgmr.msra.gmra.mxu0 %vm30_vm0, %v17_v3 }
  0x82   :  { %v43_v5 = vpop.f32.mrf.mxu0 }
  0x83   :  { %v44_v6 = vadd.f32 %v61_v4, %v43_v5 }
  0x85   :  { %49 = vst.msk [vmem:[%s103_s3] sm:$0xff] %vm48_vm1, %v44_v6 }
  0x8a   :  { %v45_v7 = vpop.f32.mrf.mxu0 }
  0x8b   :  { %v46_v8 = vadd.f32 %v61_v4, %v45_v7 }
  0x8d   :  { %50 = vst.msk [vmem:[%s103_s3 + $0x8] sm:$0xff] %vm48_vm1, %v46_v8 }

// kernel: hoganet_forward.7
= control target key start
LH: loop header
LB: loop body
LE: loop exit
PB: predicated region body
PF: predicated region fallthrough
CT: control target
= control target key end

     0   :  { %vm32_vm0 = vcmask 130048   ;;  %vm112_vm1 = vcmask 125952   ;;  %vm107_vm2 = vcmask 15360   ;;  %vm80_vm3 = vcmask 123904   ;;  %s212_s1 = inlined_call_operand.vmem [shape: bf16[1,16,16], index: 1, kind: input, shape index: {}]   ;;  %s213_s0 = inlined_call_operand.vmem [shape: f32[16,16], index: 0, kind: input, shape index: {}]   ;;  %s214_s3 = inlined_call_operand.vmem [shape: f32[1,16,2], index: 3, kind: input, shape index: {}]   ;;  %s215_s4 = inlined_call_operand.vmem [shape: bf16[1,16,16], index: 4, kind: output, shape index: {0}]   ;;  %s216_s2 = inlined_call_operand.vmem [shape: f32[1,2,16], index: 2, kind: input, shape index: {}]   ;;  %s217_s6 = inlined_call_operand.vmem [shape: f32[1,16,2], index: 6, kind: output, shape index: {2}]   ;;  %s218_s5 = inlined_call_operand.vmem [shape: f32[1,2,16], index: 5, kind: output, shape index: {1}]  }
   0x1   :  { %v137_v0 = vld [vmem:[%s212_s1] sm:$0xff]  ;;  %v22_v2 = vld [vmem:[%s213_s0 + $0x8] sm:$0xff] }
   0x2   :  { %v21_v1 = vld [vmem:[%s213_s0] sm:$0xff]  ;;  %v83_v4 = vld [vmem:[%s214_s3 + $0x8] sm:$0xff]  ;;  %43 = vmatpush.bf16.msra.mxu0 %v137_v0 }
   0x3   :  { %v23_v3 = vpack.c.bf16 %v22_v2, %v21_v1  ;;  %98 = vmatpush.msra.mxu2 %v83_v4  ;;  %v82_v5 = vld [vmem:[%s214_s3] sm:$0xff] }
   0x4   :  { %v50_v10 = vld [vmem:[%s216_s2] sm:$0x3] }
   0x5   :  { %131 = vmatmul.msk.bf16.vlgmr.msra.gmra.mxu0 %vm32_vm0, %v23_v3  ;;  %99 = vmatpush.msra.mxu2 %v82_v5 }
  0x82   :  { %v45_v6 = vpop.f32.mrf.mxu0 }
  0x83   :  { %v110_v7 = vpack.c.bf16 %v45_v6, %v45_v6  ;;  %135 = vmatmul.msk.f32.vlgmr.msra.gmra.mxu2 %vm32_vm0, %v45_v6 }
  0x85   :  { %113 = vst.msk [vmem:[%s215_s4] sm:$0xf] %vm112_vm1, %v110_v7 }
  0x8a   :  { %v47_v8 = vpop.f32.mrf.mxu0 }
  0x8b   :  { %v111_v9 = vpack.c.bf16 %v47_v8, %v47_v8  ;;  %132 = vmatpush.xpose.msk.msra.mxu1 %vm32_vm0, %v47_v8  ;;  %136 = vmatmul.msk.f32.gmra.mxu2 %vm32_vm0, %v47_v8 }
  0x8d   :  { %114 = vst.msk [vmem:[%s215_s4 + $0x4] sm:$0xf] %vm112_vm1, %v111_v9 }
  0x8f   :  { %133 = vmatpush.xpose.msk.msra.mxu1 %vm32_vm0, %v45_v6 }
  0x92   :  { %134 = vmatmul.msk.f32.vlgmr.msra.gmra.mxu1 %vm32_vm0, %v50_v10 }
 0x106   :  { %v101_v11 = vpop.f32.mrf.mxu2 }
 0x107   :  { %108 = vst.msk [vmem:[%s217_s6] sm:$0xff] %vm107_vm2, %v101_v11 }
 0x10e   :  { %v104_v12 = vpop.f32.mrf.mxu2 }
 0x10f   :  { %109 = vst.msk [vmem:[%s217_s6 + $0x8] sm:$0xff] %vm107_vm2, %v104_v12  ;;  %v77_v13 = vpop.f32.mrf.mxu1 }
 0x110   :  { %81 = vst.msk [vmem:[%s218_s5] sm:$0x3] %vm80_vm3, %v77_v13 }

</bundles_post_ra>
